<compile_context>
chip_gen: v7x
topology: tpu7x:2x2x1
jax: 0.10.0
libtpu: 0.0.40
codegen_flags: <defaults>
</compile_context>

<pallas_src>
import math

import jax
import jax.numpy as jnp
from jax.experimental import pallas as pl
from jax.experimental.pallas import tpu as pltpu

_LANE = 128
_MAX_TILE = 512   # ~85% of HBM roofline per reference measurements


def _round_up(x, m):
    return ((x + m - 1) // m) * m


def _pick_tile(n_padded):
    """n_padded is a multiple of 128; pick the largest friendly tile <= 512."""
    for t in (512, 256, 128):
        if n_padded % t == 0:
            return t
    return 128


def _vmem_limit(nbytes):
    # Generous headroom over the computed buffer bytes, but never above the
    # v7x physical VMEM of 64 MiB.
    return int(min(64 * 2**20, max(16 * 2**20, 2 * nbytes)))


# ---------------------------------------------------------------------------
# Kernel 1: support = X @ W   (row-tiled, pipelined, bf16 in / bf16 out)
# ---------------------------------------------------------------------------
def _support_kernel(x_ref, w_ref, s_ref):
    s_ref[...] = jnp.dot(
        x_ref[...], w_ref[...], preferred_element_type=jnp.float32
    ).astype(s_ref.dtype)


def _compute_support(x_bf16, w_bf16, row_tile):
    n, f_in = x_bf16.shape
    f_out = w_bf16.shape[1]
    vmem = 2 * (row_tile * f_in * 2 + f_in * f_out * 2 + row_tile * f_out * 2)
    return pl.pallas_call(
        _support_kernel,
        out_shape=jax.ShapeDtypeStruct((n, f_out), jnp.bfloat16),
        grid_spec=pltpu.PrefetchScalarGridSpec(
            num_scalar_prefetch=0,
            grid=(n // row_tile,),
            in_specs=[
                pl.BlockSpec((row_tile, f_in), lambda i: (i, 0)),  # X rows
                pl.BlockSpec((f_in, f_out), lambda i: (0, 0)),     # W (const)
            ],
            out_specs=pl.BlockSpec((row_tile, f_out), lambda i: (i, 0)),
        ),
        compiler_params=pltpu.CompilerParams(
            dimension_semantics=("parallel",),
            vmem_limit_bytes=_vmem_limit(vmem),
        ),
        cost_estimate=pl.CostEstimate(
            flops=2 * n * f_in * f_out,
            transcendentals=0,
            bytes_accessed=n * f_in * 2 + f_in * f_out * 2 + n * f_out * 2,
        ),
    )(x_bf16, w_bf16)


# ---------------------------------------------------------------------------
# Kernel 2: out = adj @ support (+ bias) (+ fused activation), k-tiled
# ---------------------------------------------------------------------------
def _apply_activation(out, activation):
    if activation == "relu":
        return jnp.maximum(out, 0.0)
    if activation == "log_softmax":
        m = jnp.max(out, axis=-1, keepdims=True)
        z = out - m
        lse = jnp.log(jnp.sum(jnp.exp(z), axis=-1, keepdims=True))
        return z - lse
    return out


def _make_aggregate_kernel(has_bias, activation):
    if has_bias:
        def kernel(adj_ref, s_ref, b_ref, o_ref, acc_ref):
            k = pl.program_id(1)

            @pl.when(k == 0)
            def _():
                acc_ref[...] = jnp.zeros_like(acc_ref)

            acc_ref[...] += jnp.dot(
                adj_ref[...], s_ref[...], preferred_element_type=jnp.float32
            )

            @pl.when(k == pl.num_programs(1) - 1)
            def _():
                out = acc_ref[...] + b_ref[...]
                o_ref[...] = _apply_activation(out, activation).astype(o_ref.dtype)
    else:
        def kernel(adj_ref, s_ref, o_ref, acc_ref):
            k = pl.program_id(1)

            @pl.when(k == 0)
            def _():
                acc_ref[...] = jnp.zeros_like(acc_ref)

            acc_ref[...] += jnp.dot(
                adj_ref[...], s_ref[...], preferred_element_type=jnp.float32
            )

            @pl.when(k == pl.num_programs(1) - 1)
            def _():
                o_ref[...] = _apply_activation(acc_ref[...], activation).astype(
                    o_ref.dtype
                )
    return kernel


def gcn_layer_forward(h_bf16, adj_bf16, w_bf16, bias, *, activation=None):
    """One GCN layer: activation(adj @ (h @ W) + bias).

    h_bf16:   [Np, F_in]  bfloat16 (Np already padded to a multiple of 128)
    adj_bf16: [Np, Np]    bfloat16 (dense, row-normalized, zero-padded)
    w_bf16:   [F_in, F_out] bfloat16
    bias:     [F_out] float32 or None
    activation: None | "relu" | "log_softmax" (fused into the epilogue)
    Hidden layers (relu) emit bf16; the final layer emits f32.
    """
    n = h_bf16.shape[0]
    f_out = w_bf16.shape[1]

    row_tile = _pick_tile(n)
    k_tile = _pick_tile(n)

    # support is computed once per layer (row-tiled) and streamed as bf16.
    support = _compute_support(h_bf16, w_bf16, row_tile)

    has_bias = bias is not None
    out_dtype = jnp.bfloat16 if activation == "relu" else jnp.float32
    out_bytes = 2 if out_dtype == jnp.bfloat16 else 4

    in_specs = [
        pl.BlockSpec((row_tile, k_tile), lambda i, k: (i, k)),  # adj slab
        pl.BlockSpec((k_tile, f_out), lambda i, k: (k, 0)),     # support slab
    ]
    operands = [adj_bf16, support]
    if has_bias:
        in_specs.append(pl.BlockSpec((1, f_out), lambda i, k: (0, 0)))
        operands.append(bias.reshape(1, f_out).astype(jnp.float32))

    vmem = (
        2 * row_tile * k_tile * 2          # adj (bf16, double buffered)
        + 2 * k_tile * f_out * 2           # support (bf16, double buffered)
        + (2 * f_out * 4 if has_bias else 0)
        + 2 * row_tile * f_out * out_bytes # output (double buffered)
        + row_tile * f_out * 4             # f32 accumulator scratch
    )
    n_trans = n * f_out if activation == "log_softmax" else 0
    bytes_acc = (
        n * n * 2
        + n * f_out * 2
        + n * f_out * out_bytes
        + (f_out * 4 if has_bias else 0)
    )

    return pl.pallas_call(
        _make_aggregate_kernel(has_bias, activation),
        out_shape=jax.ShapeDtypeStruct((n, f_out), out_dtype),
        grid_spec=pltpu.PrefetchScalarGridSpec(
            num_scalar_prefetch=0,
            grid=(n // row_tile, n // k_tile),
            in_specs=in_specs,
            out_specs=pl.BlockSpec((row_tile, f_out), lambda i, k: (i, 0)),
            scratch_shapes=[pltpu.VMEM((row_tile, f_out), jnp.float32)],
        ),
        compiler_params=pltpu.CompilerParams(
            dimension_semantics=("parallel", "arbitrary"),
            vmem_limit_bytes=_vmem_limit(vmem),
        ),
        cost_estimate=pl.CostEstimate(
            flops=2 * n * n * f_out,
            transcendentals=n_trans,
            bytes_accessed=bytes_acc,
        ),
    )(*operands)


def gcn_model_forward(x, adj, weights, biases):
    """GCNModel.forward: ReLU between layers, log_softmax(dim=1) at the end."""
    n = x.shape[0]
    n_pad = _round_up(max(n, _LANE), _LANE)
    pad = n_pad - n
    if pad:
        # Zero padding: padded adj rows/cols and x rows contribute exact zeros
        # to every real row, so results for the first n rows are unchanged.
        x = jnp.pad(x, ((0, pad), (0, 0)))
        adj = jnp.pad(adj, ((0, pad), (0, pad)))

    adj_bf16 = adj.astype(jnp.bfloat16)                 # cast once, all layers
    w_bf16 = [w.astype(jnp.bfloat16) for w in weights]  # cast once, all layers

    nlayers = len(weights)
    h = x.astype(jnp.bfloat16)
    for i in range(nlayers):
        if i < nlayers - 1:
            # TODO(synk): F.dropout between layers is inference-mode identity
            # here (training-mode random masking not implemented).
            h = gcn_layer_forward(
                h, adj_bf16, w_bf16[i], biases[i], activation="relu"
            )
        else:
            # Final layer: no ReLU; log_softmax(dim=1) fused into the kernel.
            # TODO(synk): nclass (=8) output lanes are < 128 -> masked stores;
            # class-dim padding would need a masked log_softmax, not done here.
            h = gcn_layer_forward(
                h, adj_bf16, w_bf16[i], biases[i], activation="log_softmax"
            )
    return h[:n]


# ---------------------------------------------------------------------------
# Reference (plain JAX) matching the kernel's bf16 matmul operands.
# ---------------------------------------------------------------------------
def reference_forward(x, adj, weights, biases):
    adj_b = adj.astype(jnp.bfloat16)
    h = x
    nlayers = len(weights)
    for i in range(nlayers):
        s = jnp.dot(
            h.astype(jnp.bfloat16),
            weights[i].astype(jnp.bfloat16),
            preferred_element_type=jnp.float32,
        ).astype(jnp.bfloat16)
        o = jnp.dot(adj_b, s, preferred_element_type=jnp.float32)
        o = o + biases[i][None, :]
        if i < nlayers - 1:
            h = jnp.maximum(o, 0.0).astype(jnp.bfloat16)
        else:
            h = o
    return jax.nn.log_softmax(h, axis=1)


def _make_problem(key, n, nfeat):
    k_x, k_adj = jax.random.split(key)
    x = jax.random.normal(k_x, (n, nfeat), jnp.float32)
    adj_raw = (jax.random.uniform(k_adj, (n, n)) < 0.1).astype(jnp.float32)
    adj = adj_raw + jnp.eye(n, dtype=jnp.float32)        # self-loops
    adj = adj / jnp.sum(adj, axis=1, keepdims=True)      # row-normalize
    return x, adj


if __name__ == "__main__":
    # Small synthetic problem consistent with GCNModel(nfeat, hidden, nclass).
    N = 64                      # number of graph nodes
    NFEAT = 32                  # input features
    HIDDEN = [64, 32]           # hidden layer widths
    NCLASS = 8                  # output classes
    layer_sizes = [NFEAT] + HIDDEN + [NCLASS]

    key = jax.random.PRNGKey(0)
    k_main, k_ragged, k_params = jax.random.split(key, 3)

    # Parameter init mirroring the PyTorch module:
    # uniform(-stdv, stdv), stdv = 1/sqrt(out_features), per layer.
    weights, biases = [], []
    for li in range(len(layer_sizes) - 1):
        f_in, f_out = layer_sizes[li], layer_sizes[li + 1]
        k_params, k_w, k_b = jax.random.split(k_params, 3)
        stdv = 1.0 / math.sqrt(f_out)
        weights.append(
            jax.random.uniform(k_w, (f_in, f_out), jnp.float32, -stdv, stdv)
        )
        biases.append(
            jax.random.uniform(k_b, (f_out,), jnp.float32, -stdv, stdv)
        )

    # --- test 1: small N (padded 64 -> 128) ------------------------------
    x, adj = _make_problem(k_main, N, NFEAT)
    out = jax.block_until_ready(gcn_model_forward(x, adj, weights, biases))
    ref = reference_forward(x, adj, weights, biases)

    assert out.shape == (N, NCLASS)
    assert jnp.allclose(jnp.sum(jnp.exp(out), axis=1), 1.0, atol=1e-3)
    assert jnp.allclose(out, ref, atol=1e-2, rtol=1e-2), "mismatch vs reference"

    # --- test 2: ragged N (200 -> padded 256) exercises the pad path -----
    N2 = 200
    x2, adj2 = _make_problem(k_ragged, N2, NFEAT)
    out2 = jax.block_until_ready(gcn_model_forward(x2, adj2, weights, biases))
    ref2 = reference_forward(x2, adj2, weights, biases)

    assert out2.shape == (N2, NCLASS)
    assert jnp.allclose(jnp.sum(jnp.exp(out2), axis=1), 1.0, atol=1e-3)
    assert jnp.allclose(out2, ref2, atol=1e-2, rtol=1e-2), "ragged mismatch"

    print("KERNEL_OK")
</pallas_src>

<mosaic_0001>
module attributes {stable_mosaic.version = 11 : i64} {
  func.func @_support_kernel(%arg0: i32, %arg1: memref<128x32xbf16, #tpu.memory_space<vmem>>, %arg2: memref<32x64xbf16, #tpu.memory_space<vmem>>, %arg3: memref<128x64xbf16, #tpu.memory_space<vmem>>) attributes {dimension_semantics = [#tpu.dimension_semantics<parallel>], iteration_bounds = array<i64: 1>, scalar_prefetch = 0 : i64, scratch_operands = 0 : i64, tpu.core_type = #tpu.core_type<tc>, window_params = [{transform_indices = @transform_0, window_bounds = array<i64: 128, 32>}, {pipeline_mode = #tpu.pipeline_mode<synchronous>, transform_indices = @transform_1, window_bounds = array<i64: 32, 64>}, {transform_indices = @transform_2, window_bounds = array<i64: 128, 64>}]} {
    %c0 = arith.constant 0 : index
    %c0_0 = arith.constant 0 : index
    %0 = vector.load %arg1[%c0, %c0_0] : memref<128x32xbf16, #tpu.memory_space<vmem>>, vector<128x32xbf16>
    %c0_1 = arith.constant 0 : index
    %c0_2 = arith.constant 0 : index
    %1 = vector.load %arg2[%c0_1, %c0_2] : memref<32x64xbf16, #tpu.memory_space<vmem>>, vector<32x64xbf16>
    %cst = arith.constant dense<0.000000e+00> : vector<128x64xf32>
    %2 = tpu.matmul %0, %1, %cst {dimension_numbers = #tpu.dot_dimension_numbers<[1], [0], [0], [1], [0, 0, 1, 1], [], []>} : vector<128x32xbf16>, vector<32x64xbf16>, vector<128x64xf32> -> vector<128x64xf32>
    %3 = arith.truncf %2 : vector<128x64xf32> to vector<128x64xbf16>
    %c0_3 = arith.constant 0 : index
    %c0_4 = arith.constant 0 : index
    %4 = vector.load %arg3[%c0_3, %c0_4] : memref<128x64xbf16, #tpu.memory_space<vmem>>, vector<128x64xbf16>
    tpu.vector_store %arg3[%c0_3, %c0_4], %3 {strides = array<i32>} : memref<128x64xbf16, #tpu.memory_space<vmem>>, vector<128x64xbf16>,
    return
  }
  func.func @transform_0(%arg0: i32) -> (i32, i32) {
    %c0_i32 = arith.constant 0 : i32
    %c0_i32_0 = arith.constant 0 : i32
    return %arg0, %c0_i32 : i32, i32
  }
  func.func @transform_1(%arg0: i32) -> (i32, i32) {
    %c0_i32 = arith.constant 0 : i32
    %c0_i32_0 = arith.constant 0 : i32
    %c0_i32_1 = arith.constant 0 : i32
    return %c0_i32, %c0_i32_0 : i32, i32
  }
  func.func @transform_2(%arg0: i32) -> (i32, i32) {
    %c0_i32 = arith.constant 0 : i32
    %c0_i32_0 = arith.constant 0 : i32
    return %arg0, %c0_i32 : i32, i32
  }
}

</mosaic_0001>

<bundles_post_ra>
// kernel: tpu_custom_call.1
= control target key start
LH: loop header
LB: loop body
LE: loop exit
PB: predicated region body
PF: predicated region fallthrough
CT: control target
= control target key end

     0   :  { %vm84_vm0 = vcmask 261120   ;;  %vm270_vm1 = vcmask 519168   ;;  %s502_s1 = inlined_call_operand.vmem [shape: bf16[32,64], index: 1, kind: input, shape index: {}]   ;;  %s503_s0 = inlined_call_operand.vmem [shape: bf16[128,32], index: 0, kind: input, shape index: {}]   ;;  %s504_s2 = inlined_call_operand.vmem [shape: bf16[128,64], index: 2, kind: output, shape index: {}]  }
   0x1   :  { %v375_v0 = vld [vmem:[%s502_s1] sm:$0xff]   ;;  %v376_v1 = vld [vmem:[%s502_s1 + $0x8] sm:$0xff]   ;;  %v381_v6 = vld [vmem:[%s503_s0 + $0x10] sm:$0xff]  }
   0x2   :  { %351 = vmatprep.subr.bf16.mxu0 %v375_v0  ;;  %371 = vmatprep.subr.bf16.mxu1 %v375_v0  ;;  %v377_v2 = vld [vmem:[%s503_s0] sm:$0xff]   ;;  %v379_v4 = vld [vmem:[%s503_s0 + $0x8] sm:$0xff]   ;;  %v382_v7 = vld [vmem:[%s503_s0 + $0x30] sm:$0xff]  }
   0x3   :  { %352 = vmatpush3.bf16.msra.mxu0 %v375_v0  ;;  %373 = vmatpush3.bf16.msra.mxu1 %v375_v0  ;;  %v378_v3 = vld [vmem:[%s503_s0 + $0x20] sm:$0xff]   ;;  %v380_v5 = vld [vmem:[%s503_s0 + $0x28] sm:$0xff]   ;;  %v383_v8 = vld [vmem:[%s503_s0 + $0x18] sm:$0xff]  }
   0x4   :  { %353 = vmatprep.subr.bf16.mxu0 %v376_v1  ;;  %372 = vmatprep.subr.bf16.mxu1 %v376_v1  ;;  %v384_v9 = vld [vmem:[%s503_s0 + $0x38] sm:$0xff]  }
   0x5   :  { %355 = vmatprep.mubr.msk.bf16.mxu0 %vm84_vm0, %v377_v2  ;;  %363 = vmatprep.mubr.msk.bf16.mxu1 %vm84_vm0, %v378_v3 }
   0x7   :  { %354 = vmatpush3.bf16.msra.mxu0 %v376_v1  ;;  %374 = vmatpush3.bf16.msra.mxu1 %v376_v1 }
   0xa   :  { %356 = vmatmul.mubr.msk.bf16.vlgmr.msra.gmra.mrb[0].mxu0 %vm84_vm0, %v379_v4  ;;  %364 = vmatmul.mubr.msk.bf16.vlgmr.msra.gmra.mrb[0].mxu1 %vm84_vm0, %v380_v5 }
   0xb   :  { %359 = vmatprep.mubr.msk.bf16.mxu0 %vm84_vm0, %v381_v6  ;;  %367 = vmatprep.mubr.msk.bf16.mxu1 %vm84_vm0, %v382_v7 }
  0x12   :  { %360 = vmatmul.mubr.msk.bf16.gmra.mrb[4].mxu0 %vm84_vm0, %v383_v8  ;;  %368 = vmatmul.mubr.msk.bf16.gmra.mrb[4].mxu1 %vm84_vm0, %v384_v9 }
  0xdd   :  { %v357_v10 = vpop.f32.mrb[0].mxu0  ;;  %v365_v11 = vpop.f32.mrb[0].mxu1 }
  0xde   :  { %v327_v12 = vpack.c.bf16 %v357_v10, %v357_v10  ;;  %v335_v13 = vpack.c.bf16 %v365_v11, %v365_v11  ;;  %v143_v14 = vpop.f32.mrb[1].mxu0  ;;  %v175_v15 = vpop.f32.mrb[1].mxu1 }
  0xdf   :  { %v325_v16 = vpack.c.bf16 %v143_v14, %v143_v14  ;;  %v333_v17 = vpack.c.bf16 %v175_v15, %v175_v15  ;;  %v358_v18 = vpop.f32.mrb[2].mxu0  ;;  %v366_v19 = vpop.f32.mrb[2].mxu1 }
  0xe0   :  { %273 = vst.msk [vmem:[%s504_s2 + $0x8] sm:$0xf] %vm270_vm1, %v327_v12  ;;  %281 = vst.msk [vmem:[%s504_s2 + $0x28] sm:$0xf] %vm270_vm1, %v335_v13  ;;  %v328_v20 = vpack.c.bf16 %v358_v18, %v358_v18  ;;  %v336_v21 = vpack.c.bf16 %v366_v19, %v366_v19  ;;  %v146_v22 = vpop.f32.mrb[3].mxu0  ;;  %v178_v23 = vpop.f32.mrb[3].mxu1 }
  0xe1   :  { %271 = vst.msk [vmem:[%s504_s2] sm:$0xf] %vm270_vm1, %v325_v16  ;;  %279 = vst.msk [vmem:[%s504_s2 + $0x20] sm:$0xf] %vm270_vm1, %v333_v17  ;;  %v326_v24 = vpack.c.bf16 %v146_v22, %v146_v22  ;;  %v334_v25 = vpack.c.bf16 %v178_v23, %v178_v23 }
  0xe2   :  { %274 = vst.msk [vmem:[%s504_s2 + $0xc] sm:$0xf] %vm270_vm1, %v328_v20  ;;  %282 = vst.msk [vmem:[%s504_s2 + $0x2c] sm:$0xf] %vm270_vm1, %v336_v21 }
  0xe3   :  { %272 = vst.msk [vmem:[%s504_s2 + $0x4] sm:$0xf] %vm270_vm1, %v326_v24  ;;  %280 = vst.msk [vmem:[%s504_s2 + $0x24] sm:$0xf] %vm270_vm1, %v334_v25 }
  0xe5   :  { %v361_v26 = vpop.f32.mrb[4].mxu0  ;;  %v369_v27 = vpop.f32.mrb[4].mxu1 }
  0xe6   :  { %v331_v28 = vpack.c.bf16 %v361_v26, %v361_v26  ;;  %v339_v29 = vpack.c.bf16 %v369_v27, %v369_v27  ;;  %v159_v30 = vpop.f32.mrb[5].mxu0  ;;  %v191_v31 = vpop.f32.mrb[5].mxu1 }
  0xe7   :  { %v329_v32 = vpack.c.bf16 %v159_v30, %v159_v30  ;;  %v337_v33 = vpack.c.bf16 %v191_v31, %v191_v31  ;;  %v362_v34 = vpop.f32.mrb[6].mxu0  ;;  %v370_v35 = vpop.f32.mrb[6].mxu1 }
  0xe8   :  { %277 = vst.msk [vmem:[%s504_s2 + $0x18] sm:$0xf] %vm270_vm1, %v331_v28  ;;  %285 = vst.msk [vmem:[%s504_s2 + $0x38] sm:$0xf] %vm270_vm1, %v339_v29  ;;  %v332_v36 = vpack.c.bf16 %v362_v34, %v362_v34  ;;  %v340_v37 = vpack.c.bf16 %v370_v35, %v370_v35  ;;  %v162_v38 = vpop.f32.mrb[7].mxu0  ;;  %v194_v39 = vpop.f32.mrb[7].mxu1 }
  0xe9   :  { %275 = vst.msk [vmem:[%s504_s2 + $0x10] sm:$0xf] %vm270_vm1, %v329_v32  ;;  %283 = vst.msk [vmem:[%s504_s2 + $0x30] sm:$0xf] %vm270_vm1, %v337_v33  ;;  %v330_v40 = vpack.c.bf16 %v162_v38, %v162_v38  ;;  %v338_v41 = vpack.c.bf16 %v194_v39, %v194_v39 }
  0xea   :  { %278 = vst.msk [vmem:[%s504_s2 + $0x1c] sm:$0xf] %vm270_vm1, %v332_v36  ;;  %286 = vst.msk [vmem:[%s504_s2 + $0x3c] sm:$0xf] %vm270_vm1, %v340_v37 }
  0xeb   :  { %276 = vst.msk [vmem:[%s504_s2 + $0x14] sm:$0xf] %vm270_vm1, %v330_v40  ;;  %284 = vst.msk [vmem:[%s504_s2 + $0x34] sm:$0xf] %vm270_vm1, %v338_v41 }

</bundles_post_ra>
